<compile_context>
chip_gen: v7x
topology: tpu7x:2x2x1
jax: 0.10.0
libtpu: 0.0.40
codegen_flags: <defaults>
</compile_context>

<pallas_src>
import jax
import jax.numpy as jnp
from jax.experimental import pallas as pl
from jax.experimental.pallas import tpu as pltpu

_LANE = 128
_TILE_B_MAX = 64 * 1024   # 64K rows -> ~8 MiB of double-buffered in+out windows
_TILE_B_MIN = 8 * 1024    # keep per-step HBM traffic >> per-step fixed overhead
_MIN_GRID_STEPS = 16      # >= 8 steps per TensorCore on v7x's 2-TC chips
_SMALL_B = 4096           # below this, plain jnp (fused by XLA) wins


def linear_add_kernel(xT_ref, wc_ref, oT_ref):
    """xT:(3,tb)  wc:(8,4)=[W | bias+other]  ->  oT:(8,tb).

    Pure VPU: per k, an (8,1) weight-column broadcast times a (1,tb) input row
    broadcast, accumulated into a lane-dense (8,tb) tile.  No MXU, no masked
    stores, no cross-lane shuffles.
    """
    x = xT_ref[...]                                   # (3, tb)
    wc = wc_ref[...]                                  # (8, 4)
    acc = wc[:, 3:4] + wc[:, 0:1] * x[0:1, :]         # (8,1)*(1,tb) -> (8,tb)
    acc = acc + wc[:, 1:2] * x[1:2, :]
    acc = acc + wc[:, 2:3] * x[2:3, :]
    oT_ref[...] = acc.astype(oT_ref.dtype)


def _round_up(x, m):
    return ((x + m - 1) // m) * m


def prepare_params(weight, bias, other):
    """One-time parameter prep (init time, NOT per forward call).

    weight: (N_out, K_in) PyTorch layout.  bias and the additive constant are
    folded with the weight into a single resident (N_out, K_in + 1) operand.
    """
    w = jnp.asarray(weight, jnp.float32)                      # (N, K)
    const = (jnp.asarray(bias, jnp.float32).reshape(-1)
             + jnp.asarray(other, jnp.float32).reshape(-1))   # (N,)
    return jnp.concatenate([w, const[:, None]], axis=1)       # (N, K+1)


def model_forward(x, wc, *, force_pallas=False, tile_b=None):
    """x: (B, 3) f32; wc: (8, 4) = [W | bias+other].  Returns (B, 8) f32."""
    B, K = x.shape
    N = wc.shape[0]
    assert wc.shape == (N, K + 1)

    if B < _SMALL_B and not force_pallas:
        # Tiny batches: custom-call + pipeline setup overhead exceeds the op.
        return x @ wc[:, :K].T + wc[:, K][None, :]

    if tile_b is None:
        # At least _MIN_GRID_STEPS grid steps (v7x 2-TC balance + pipelining),
        # at most 64K rows (VMEM budget under every generation's scoped
        # default), never below 8K rows (step-overhead amortization), and
        # never wider than the lane-rounded batch itself.
        tile_b = max(_TILE_B_MIN,
                     min(_TILE_B_MAX,
                         _round_up(pl.cdiv(B, _MIN_GRID_STEPS), _LANE)))
    tile_b = min(tile_b, _round_up(B, _LANE))
    grid = (pl.cdiv(B, tile_b),)   # ragged last block handled by Pallas

    x_t = x.T                      # (K, B): lane-dense plumbing, outside kernel
    o_t = pl.pallas_call(
        linear_add_kernel,
        out_shape=jax.ShapeDtypeStruct((N, B), jnp.float32),
        grid=grid,
        in_specs=[
            pl.BlockSpec((K, tile_b), lambda i: (0, i)),
            pl.BlockSpec((N, K + 1), lambda i: (0, 0)),   # resident params
        ],
        out_specs=pl.BlockSpec((N, tile_b), lambda i: (0, i)),
        compiler_params=pltpu.CompilerParams(
            dimension_semantics=("parallel",)),
    )(x_t, wc)
    return o_t.T                   # (B, N)


if __name__ == "__main__":
    key = jax.random.PRNGKey(0)
    k_x1, k_x2, k_w, k_b, k_o = jax.random.split(key, 5)

    K_in, N_out = 3, 8             # nn.Linear(3, 8)
    weight = jax.random.normal(k_w, (N_out, K_in), dtype=jnp.float32)  # (out,in)
    bias = jax.random.normal(k_b, (N_out,), dtype=jnp.float32)
    other = jax.random.normal(k_o, (1, N_out), dtype=jnp.float32)
    wc = prepare_params(weight, bias, other)      # init-time, not per call

    def ref_fn(v):
        return v @ weight.T + bias[None, :] + other

    # (1) Pallas path with a multi-step cdiv grid and a ragged last block.
    B1 = 300
    x1 = jax.random.normal(k_x1, (B1, K_in), dtype=jnp.float32)
    out1 = model_forward(x1, wc, force_pallas=True, tile_b=128)   # grid=(3,)
    jax.block_until_ready(out1)
    assert out1.shape == (B1, N_out)
    assert jnp.allclose(out1, ref_fn(x1), atol=1e-5, rtol=1e-5)

    # (2) Pallas path at the tiniest batch (single padded block).
    B2 = 4
    x2 = jax.random.normal(k_x2, (B2, K_in), dtype=jnp.float32)
    out2 = model_forward(x2, wc, force_pallas=True)
    jax.block_until_ready(out2)
    assert out2.shape == (B2, N_out)
    assert jnp.allclose(out2, ref_fn(x2), atol=1e-5, rtol=1e-5)

    # (3) Small-B fast path (plain jnp, no custom call).
    out3 = model_forward(x2, wc)
    jax.block_until_ready(out3)
    assert jnp.allclose(out3, ref_fn(x2), atol=1e-5, rtol=1e-5)

    print("KERNEL_OK")
</pallas_src>

<mosaic_0001>
module attributes {stable_mosaic.version = 11 : i64} {
  func.func @linear_add_kernel(%arg0: i32, %arg1: memref<3x128xf32, #tpu.memory_space<vmem>>, %arg2: memref<8x4xf32, #tpu.memory_space<vmem>>, %arg3: memref<8x128xf32, #tpu.memory_space<vmem>>) attributes {dimension_semantics = [#tpu.dimension_semantics<parallel>], iteration_bounds = array<i64: 3>, scalar_prefetch = 0 : i64, scratch_operands = 0 : i64, tpu.core_type = #tpu.core_type<tc>, window_params = [{transform_indices = @transform_0, window_bounds = array<i64: 3, 128>}, {pipeline_mode = #tpu.pipeline_mode<synchronous>, transform_indices = @transform_1, window_bounds = array<i64: 8, 4>}, {transform_indices = @transform_2, window_bounds = array<i64: 8, 128>}]} {
    %c0 = arith.constant 0 : index
    %c0_0 = arith.constant 0 : index
    %0 = vector.load %arg1[%c0, %c0_0] : memref<3x128xf32, #tpu.memory_space<vmem>>, vector<3x128xf32>
    %c0_1 = arith.constant 0 : index
    %c0_2 = arith.constant 0 : index
    %1 = vector.load %arg2[%c0_1, %c0_2] : memref<8x4xf32, #tpu.memory_space<vmem>>, vector<8x4xf32>
    %2 = vector.extract_strided_slice %1 {offsets = [0, 3], sizes = [8, 1], strides = [1, 1]} : vector<8x4xf32> to vector<8x1xf32>
    %3 = vector.extract_strided_slice %1 {offsets = [0, 0], sizes = [8, 1], strides = [1, 1]} : vector<8x4xf32> to vector<8x1xf32>
    %4 = vector.extract_strided_slice %0 {offsets = [0, 0], sizes = [1, 128], strides = [1, 1]} : vector<3x128xf32> to vector<1x128xf32>
    %5 = vector.broadcast %3 : vector<8x1xf32> to vector<8x128xf32>
    %6 = vector.broadcast %4 : vector<1x128xf32> to vector<8x128xf32>
    %7 = arith.mulf %5, %6 : vector<8x128xf32>
    %8 = vector.broadcast %2 : vector<8x1xf32> to vector<8x128xf32>
    %9 = arith.addf %8, %7 : vector<8x128xf32>
    %10 = vector.extract_strided_slice %1 {offsets = [0, 1], sizes = [8, 1], strides = [1, 1]} : vector<8x4xf32> to vector<8x1xf32>
    %11 = vector.extract_strided_slice %0 {offsets = [1, 0], sizes = [1, 128], strides = [1, 1]} : vector<3x128xf32> to vector<1x128xf32>
    %12 = vector.broadcast %10 : vector<8x1xf32> to vector<8x128xf32>
    %13 = vector.broadcast %11 : vector<1x128xf32> to vector<8x128xf32>
    %14 = arith.mulf %12, %13 : vector<8x128xf32>
    %15 = arith.addf %9, %14 : vector<8x128xf32>
    %16 = vector.extract_strided_slice %1 {offsets = [0, 2], sizes = [8, 1], strides = [1, 1]} : vector<8x4xf32> to vector<8x1xf32>
    %17 = vector.extract_strided_slice %0 {offsets = [2, 0], sizes = [1, 128], strides = [1, 1]} : vector<3x128xf32> to vector<1x128xf32>
    %18 = vector.broadcast %16 : vector<8x1xf32> to vector<8x128xf32>
    %19 = vector.broadcast %17 : vector<1x128xf32> to vector<8x128xf32>
    %20 = arith.mulf %18, %19 : vector<8x128xf32>
    %21 = arith.addf %15, %20 : vector<8x128xf32>
    %c0_3 = arith.constant 0 : index
    %c0_4 = arith.constant 0 : index
    %22 = vector.load %arg3[%c0_3, %c0_4] : memref<8x128xf32, #tpu.memory_space<vmem>>, vector<8x128xf32>
    tpu.vector_store %arg3[%c0_3, %c0_4], %21 {strides = array<i32>} : memref<8x128xf32, #tpu.memory_space<vmem>>, vector<8x128xf32>,
    return
  }
  func.func @transform_0(%arg0: i32) -> (i32, i32) {
    %c0_i32 = arith.constant 0 : i32
    %c0_i32_0 = arith.constant 0 : i32
    return %c0_i32, %arg0 : i32, i32
  }
  func.func @transform_1(%arg0: i32) -> (i32, i32) {
    %c0_i32 = arith.constant 0 : i32
    %c0_i32_0 = arith.constant 0 : i32
    %c0_i32_1 = arith.constant 0 : i32
    return %c0_i32, %c0_i32_0 : i32, i32
  }
  func.func @transform_2(%arg0: i32) -> (i32, i32) {
    %c0_i32 = arith.constant 0 : i32
    %c0_i32_0 = arith.constant 0 : i32
    return %c0_i32, %arg0 : i32, i32
  }
}

</mosaic_0001>

<bundles_post_ra>
// kernel: tpu_custom_call.1
= control target key start
LH: loop header
LB: loop body
LE: loop exit
PB: predicated region body
PF: predicated region fallthrough
CT: control target
= control target key end

     0   :  { %7 = vsyncpa [#allocation3], 0  ;;  %s495_s0 = inlined_call_operand.vmem [shape: f32[3,300], index: 0, kind: input, shape index: {}]   ;;  %s496_s1 = inlined_call_operand.vmem [shape: f32[8,4], index: 1, kind: input, shape index: {}]   ;;  %s497_s2 = inlined_call_operand.hbm [shape: f32[8,300], index: 2, kind: output, shape index: {}]  }
   0x1   :  { %9 = vsyncpa [#allocation3 + $0x1], 0  ;;  %s392_s9 = smov 0   ;;  %s394_s10 = smov 0  }
   0x2   :  { %s396_s11 = smov 0   ;;  %s398_s12 = smov 0  }
   0x3 LB: > { %s413_s13 = sadd.s32 4294967295, %s370_s12   ;;  %s250_s14 = sadd.s32 4294967294, %s370_s12   ;;  %s370_s12 = sphi %s398_s12, %s503_s12   ;;  %s366_s11 = sphi %s396_s11, %s502_s11   ;;  %s362_s10 = sphi %s394_s10, %s501_s10   ;;  %s358_s9 = sphi %s392_s9, %s500_s9  }
   0x4   : > { %s417_s15 = sadd.s32 1, %s370_s12   ;;  %s69_s16 = sadd.s32 1, %s366_s11 }
   0x5   : > { %s66_s17 = ssub.s32 %s370_s12, %s417_s15  ;;  %p79_p0 = scmp.ne.s32.totalorder %s366_s11, %s362_s10 }
   0x6   : > { %p67_p1 = scmp.eq.s32.totalorder %s66_s17, 0  ;;  %p80_p2 = scmp.eq.s32.totalorder %s413_s13, 2 }
   0x7   : > { %p85_p3 = scmp.ne.s32.totalorder %s362_s10, %s358_s9  ;;  %p86_p4 = scmp.eq.s32.totalorder %s250_s14, 2 }
   0x8   : > { %s428_s18 = scalar_select %p67_p1, %s366_s11, %s69_s16  }
   0x9   : > { %p430_p5 = por %p80_p2, %p79_p0  ;;  %p434_p6 = por %p86_p4, %p85_p3 }
   0xa   : > { %p253_p7 = scmp.ge.s32.totalorder %s370_s12, 1  ;;  %p114_p8 = scmp.lt.s32.totalorder %s370_s12, 4 }
   0xc   : > { %p115_p9 = pnand %p253_p7, %p114_p8 }
   0xd   : > { %v140_v0 = vld [vmem:[%s496_s1] sm:$0xff] (!%p115_p9)  ;;  %v372_v1 = vmov (!%p115_p9), 0   ;;  %v373_v2 = vmov (!%p115_p9), 1   ;;  %v374_v3 = vmov (!%p115_p9), 3   ;;  %v375_v4 = vmov (!%p115_p9), 2   ;;  %p135_p10 = scmp.lt.s32.totalorder (!%p115_p9), %s413_s13, 2 }
   0xe   : > { %118 = sbr.rel (%p115_p9) target bundleno = 168 (0xa8), region = 28  ;;  %303 = vset.pattern.permute.xlu0 (!%p115_p9), %v372_v1  ;;  %305 = vset.pattern.permute.xlu1 (!%p115_p9), %v373_v2  ;;  %v146_v5 = vlaneseq (!%p115_p9)  ;;  %s132_s28 = sand.u32 (!%p115_p9), 1, %s362_s10  }
   0xf   : > { %143 = vperm.xlu0 (!%p115_p9), %303, %v140_v0   ;;  %157 = vperm.xlu1 (!%p115_p9), %305, %v140_v0   ;;  %s254_s29 = sshll.u32 (!%p115_p9), %s132_s28, 3  ;;  %s257_s30 = sshll.u32 (!%p115_p9), %s413_s13, 7 }
  0x10   : > { %v147_v6 = vshrl.u32 (!%p115_p9), %v146_v5, 7  ;;  %s134_s3 = scalar_lea.vmem (!%p115_p9), [#allocation2], %s254_s29  ;;  %s453_s7 = scalar_lea.hbm (!%p115_p9), %s497_s2, %s257_s30 }
  0x11   : > { %s191_s4 = sshll.u32 (!%p115_p9), %s134_s3, 4  ;;  %s178_s8 = scalar_lea.sflag (!%p115_p9), [#allocation3], %s132_s28  ;;  %s455_s4 = int_to_ptr.vmem [resolvable:$true] %s191_s4 }
  0x12   : > { %v148_v7 = vsub.s32 (!%p115_p9), 0, %v147_v6  ;;  %v162_v9 = vsub.s32 (!%p115_p9), 1, %v147_v6  ;;  %v172_v10 = vsub.s32 (!%p115_p9), 2, %v147_v6  ;;  %s308_s14 = scalar_lea.vmem (!%p115_p9), %s455_s4, 128 }
  0x13   : > { %304 = vset.pattern.permute.xlu0 (!%p115_p9), %v374_v3  ;;  %306 = vset.pattern.permute.xlu1 (!%p115_p9), %v375_v4  ;;  %p309_p11 = scmp.ne.s32.totalorder (!%p115_p9), %s455_s4, %s308_s14 }
  0x14   : > { %152 = vperm.xlu0 (!%p115_p9), %304, %v140_v0   ;;  %167 = vperm.xlu1 (!%p115_p9), %306, %v140_v0  }
  0x15   : > { %s136_s23 = scalar_select %p135_p10, %s413_s13, 2 }
  0x16   : > { %p310_p12 = pnand %p309_p11, %p430_p5  ;;  %s376_s13 = smov [#allocation2]  }
  0x17   : > { %s255_s24 = sshll.u32 %s136_s23, 2  ;;  %s312_s16 = sshll.u32 %s376_s13, 4  ;;  %s313_s16 = int_to_ptr.vmem [resolvable:$false] %s312_s16 }
  0x18   : > { %307 = vset.pattern.permute.xlu0 %v375_v4  ;;  %s138_s27 = scalar_lea.vmem %s495_s0, %s255_s24  ;;  %p311_p13 = pneg %p310_p12 }
  0x19   : > { %v139_v8 = vld [vmem:[%s138_s27] sm:$0x7]  ;;  %s314_s17 = scalar_lea.vmem %s313_s16, 256  ;;  %p315_p0 = scmp.lt.s32.totalorder %s455_s4, %s313_s16 }
  0x1a   : > { %v149_v12 = vrot.slane %v139_v8, %v148_v7  ;;  %v163_v14 = vrot.slane %v139_v8, %v162_v9  ;;  %v173_v15 = vrot.slane %v139_v8, %v172_v10  ;;  %p316_p1 = scmp.lt.s32.totalorder %s314_s17, %s308_s14 }
  0x1c   : > { %p317_p2 = por %p316_p1, %p315_p0 }
  0x1e   : > { %p318_p3 = pnand %p317_p2, %p311_p13 }
  0x8e   : > { %v144_v11 = vpop.permute.xlu0 %143  ;;  %v158_v13 = vpop.permute.xlu1 %157 }
  0x8f   : > { %v150_v16 = vmul.f32 %v149_v12, %v144_v11  ;;  %v164_v19 = vmul.f32 %v163_v14, %v158_v13 }
  0x93   : > { %v153_v17 = vpop.permute.xlu0 %152  ;;  %v168_v18 = vpop.permute.xlu1 %167 }
  0x94   : > { %v155_v20 = vadd.f32 %v153_v17, %v150_v16  ;;  %v174_v21 = vmul.f32 %v173_v15, %v168_v18 }
  0x96   : > { %v165_v22 = vadd.f32 %v164_v19, %v155_v20 }
  0x98   : > { %v175_v23 = vadd.f32 %v174_v21, %v165_v22 }
  0x9a   : > { %176 = vst [vmem:[%s134_s3] sm:$0xff] %v175_v23 }
  0x9b   : > { %321 = shalt.err (!%p318_p3)
}
  0x9c   : > { %s322_s21 = scalar_lea.hbm %s453_s7, 128  ;;  %s326_s24 = scalar_lea.hbm %s497_s2, 384 }
  0x9d   : > { %p323_p4 = scmp.ne.s32.totalorder %s453_s7, %s322_s21  ;;  %p327_p9 = scmp.lt.u32.totalorder %s453_s7, %s497_s2 }
  0x9e   : > { %p328_p10 = scmp.lt.u32.totalorder %s326_s24, %s322_s21  ;;  %p330_p12 = scmp.lt.u32.totalorder %s322_s21, %s453_s7 }
  0x9f   : > { %p324_p7 = pnand %p323_p4, %p430_p5 }
  0xa0   : > { %p329_p11 = por %p328_p10, %p327_p9 }
  0xa1   : > { %p325_p8 = pneg %p324_p7 }
  0xa2   : > { %p331_p13 = por %p330_p12, %p329_p11 }
  0xa4   : > { %p332_p0 = pnand %p331_p13, %p325_p8 }
  0xa6   : > { %335 = shalt.err (!%p332_p0)
}
  0xa7   : > { %260 = dma.vmem_to_hbm [thread:$0]  (%p430_p5), %s455_s4, 128, %s453_s7, %s178_s8  }
  0xa8 PF: > { %p266_p1 = scmp.ge.s32.totalorder %s370_s12, 2  ;;  %s203_s27 = sand.u32 1, %s358_s9  }
  0xa9   : > { %s204_s28 = scalar_lea.sflag [#allocation3], %s203_s27 }
  0xaa   : > { %p263_p2 = pnand %p266_p1, %p434_p6 }
  0xac   : > { %353 = dma.done.wait (!%p263_p2), %s204_s28, 128  }
  0xad   : > { %355 = vsyncadd (!%p263_p2), %s204_s28, 4294967168  ;;  %p12_p3 = scmp.ge.s32.totalorder %s417_s15, 5   ;;  %s500_s9 = smov %s362_s10 }
  0xae   : > { %s501_s10 = smov %s366_s11  ;;  %s502_s11 = smov %s428_s18 }
  0xaf   : > { %s503_s12 = smov %s417_s15  ;;  %14 = sbr.rel (!%p12_p3) target bundleno = 3 (0x3), region = 63 }
  0xb6   :  { %209 = vsyncpa [#allocation3], 1 }
  0xb7   :  { %211 = vsyncpa [#allocation3 + $0x1], 1 }

</bundles_post_ra>
